<compile_context>
chip_gen: v7x
topology: tpu7x:2x2x1
jax: 0.10.0
libtpu: 0.0.40
codegen_flags: <defaults>
</compile_context>

<pallas_src>
import functools

import jax
import jax.numpy as jnp
from jax.experimental import pallas as pl
from jax.experimental.pallas import tpu as pltpu


_LANE = 128
_MAX_HW_TILE = 512   # 512-lane tiles hit ~85% of HBM roofline; keeps feat in vregs


def _round_up(x, m):
    return ((x + m - 1) // m) * m


def _pick_hw_tile(hw, max_tile=_MAX_HW_TILE):
    """Largest multiple of 128 that divides hw and is <= max_tile, else hw itself."""
    if hw <= max_tile:
        return hw
    t = (max_tile // _LANE) * _LANE
    while t >= _LANE:
        if hw % t == 0:
            return t
        t -= _LANE
    return hw   # full-row block is always legal (== array dim)


# ---------------------------------------------------------------------------
# Fused predictor kernel (backbone + pool + head + sigmoid + BCE-with-logits)
# ---------------------------------------------------------------------------
def _predictor_kernel(x_ref, wc_ref, bc_ref, wf_ref, bf_ref, attr_ref,
                      probs_ref, loss_ref, acc_ref, *, hw, num_attrs):
    """One grid step = (image n, spatial tile t).

    x_ref:    (C, TILE_HW)  bf16  image slab, HW lane-dense
    wc_ref:   (F, C)        f32   1x1-conv weight (transposed)
    bc_ref:   (F, 1)        f32   conv bias
    wf_ref:   (F, A_pad)    f32   attribute-head weight (zero padded)
    bf_ref:   (1, A_pad)    f32   attribute-head bias   (zero padded)
    attr_ref: (1, A_pad)    f32   targets (zero padded; zeros on test path)
    probs_ref:(1, A_pad)    f32   sigmoid probabilities for image n
    loss_ref: (1, 1)        f32   per-image BCE-with-logits SUM over real attrs
    acc_ref:  (F, 1)        f32   persistent pooled-sum accumulator (scratch)
    """
    t = pl.program_id(1)

    @pl.when(t == 0)
    def _init():
        acc_ref[...] = jnp.zeros_like(acc_ref)

    x = x_ref[...].astype(jnp.float32)       # upcast per tile; f32 VPU math on all gens
    wc = wc_ref[...]                         # (F, C)
    c_dim = x.shape[0]

    if c_dim <= 16:
        # tiny contraction dim: C broadcast-FMAs on the VPU (no K=4 MXU waste)
        feat = wc[:, 0:1] * x[0:1, :] + bc_ref[...]
        for c in range(1, c_dim):
            feat = feat + wc[:, c:c + 1] * x[c:c + 1, :]
    else:
        # large channel count: use the MXU
        feat = jnp.dot(wc, x, preferred_element_type=jnp.float32) + bc_ref[...]
    feat = jnp.maximum(feat, 0.0)            # (F, TILE_HW)

    # global-average-pool partial sum (lane reduce), accumulated across HW tiles
    acc_ref[...] += jnp.sum(feat, axis=1, keepdims=True)

    @pl.when(t == pl.num_programs(1) - 1)
    def _finalize():
        pooled = acc_ref[...] * (1.0 / hw)                        # true H*W
        logits = (jnp.sum(pooled * wf_ref[...], axis=0, keepdims=True)
                  + bf_ref[...])                                  # (1, A_pad)
        probs_ref[...] = jax.nn.sigmoid(logits)

        # numerically stable BCE with logits, masked to the real attributes
        tgt = attr_ref[...]
        bce = (jnp.maximum(logits, 0.0) - logits * tgt
               + jnp.log(1.0 + jnp.exp(-jnp.abs(logits))))
        valid = jax.lax.broadcasted_iota(jnp.int32, bce.shape, 1) < num_attrs
        loss_ref[...] = jnp.sum(jnp.where(valid, bce, 0.0), axis=1, keepdims=True)


# ---------------------------------------------------------------------------
# pallas_call wrapper
# ---------------------------------------------------------------------------
def _predict_fused(img_nchw, attr, wc_t, bc, wf_pad, bf_pad, num_attrs):
    n, c, h, w = img_nchw.shape
    hw = h * w
    f = wc_t.shape[0]
    a_pad = wf_pad.shape[1]

    tile_hw = _pick_hw_tile(hw)
    num_t = hw // tile_hw                      # tile_hw divides hw by construction

    # NCHW kept as-is: free reshape to (N, C, HW); carry bf16 to halve HBM traffic
    x = img_nchw.reshape(n, c, hw).astype(jnp.bfloat16)

    attr_p = jnp.zeros((n, 1, a_pad), jnp.float32)
    if attr is not None:
        attr_p = attr_p.at[:, 0, :num_attrs].set(attr.astype(jnp.float32))

    kernel = functools.partial(_predictor_kernel, hw=float(hw), num_attrs=num_attrs)

    grid_spec = pltpu.PrefetchScalarGridSpec(
        num_scalar_prefetch=0,
        grid=(n, num_t),
        in_specs=[
            pl.BlockSpec((None, c, tile_hw), lambda i, t: (i, 0, t)),   # x
            pl.BlockSpec((f, c),            lambda i, t: (0, 0)),       # conv W^T
            pl.BlockSpec((f, 1),            lambda i, t: (0, 0)),       # conv b
            pl.BlockSpec((f, a_pad),        lambda i, t: (0, 0)),       # fc W (padded)
            pl.BlockSpec((1, a_pad),        lambda i, t: (0, 0)),       # fc b (padded)
            pl.BlockSpec((None, 1, a_pad),  lambda i, t: (i, 0, 0)),    # targets
        ],
        out_specs=[
            pl.BlockSpec((None, 1, a_pad),  lambda i, t: (i, 0, 0)),    # probs
            pl.BlockSpec((None, 1, 1),      lambda i, t: (i, 0, 0)),    # per-image loss
        ],
        scratch_shapes=[pltpu.VMEM((f, 1), jnp.float32)],
    )

    cost = pl.CostEstimate(
        flops=int(2 * n * hw * c * f + 3 * n * hw * f + 2 * n * f * a_pad),
        transcendentals=int(3 * n * a_pad),
        bytes_accessed=int(x.size * 2 + attr_p.size * 4
                           + (f * c + f + f * a_pad + a_pad) * 4
                           + n * a_pad * 4 + n * 4),
    )

    probs_pad, loss_sums = pl.pallas_call(
        kernel,
        grid_spec=grid_spec,
        out_shape=[
            jax.ShapeDtypeStruct((n, 1, a_pad), jnp.float32),
            jax.ShapeDtypeStruct((n, 1, 1), jnp.float32),
        ],
        compiler_params=pltpu.CompilerParams(
            dimension_semantics=("parallel", "arbitrary"),
            vmem_limit_bytes=32 * 1024 * 1024,
        ),
        cost_estimate=cost,
    )(x, wc_t, bc.reshape(f, 1), wf_pad, bf_pad.reshape(1, a_pad), attr_p)

    probs = probs_pad[:, 0, :num_attrs]
    loss_sum = jnp.sum(loss_sums)
    return probs, loss_sum


# ---------------------------------------------------------------------------
# Pure-JAX reference (for correctness checks)
# ---------------------------------------------------------------------------
def _reference_forward(img, attr, wc_t, bc, wf_pad, bf_pad, num_attrs):
    n, c, h, w = img.shape
    x = img.astype(jnp.bfloat16).astype(jnp.float32).reshape(n, c, h * w)
    feat = jnp.maximum(
        jnp.einsum('fc,ncp->nfp', wc_t, x, precision='highest')
        + bc[None, :, None], 0.0)
    pooled = jnp.mean(feat, axis=2)                                   # (n, f)
    logits = jnp.dot(pooled, wf_pad[:, :num_attrs], precision='highest') \
        + bf_pad[:num_attrs]
    probs = jax.nn.sigmoid(logits)
    loss = None
    if attr is not None:
        tgt = attr.astype(jnp.float32)
        bce = (jnp.maximum(logits, 0.0) - logits * tgt
               + jnp.log1p(jnp.exp(-jnp.abs(logits))))
        loss = jnp.mean(bce)
    return probs, loss


# ---------------------------------------------------------------------------
# Concrete BasePredictor realization (mirrors the PyTorch dispatch semantics)
# ---------------------------------------------------------------------------
class PallasPredictor:
    def __init__(self, key, in_channels=4, feat_dim=32, num_attrs=16):
        k1, k2, k3, k4 = jax.random.split(key, 4)
        self.num_attrs = num_attrs
        self.a_pad = _round_up(max(num_attrs, _LANE), _LANE)
        # 1x1-conv weight stored pre-transposed as (F, C) == torch weight[:, :, 0, 0]
        self.conv_w_t = (jax.random.normal(k1, (feat_dim, in_channels), jnp.float32)
                         * (1.0 / jnp.sqrt(in_channels)))
        self.conv_b = jax.random.normal(k2, (feat_dim,), jnp.float32) * 0.01
        # attribute head, zero-padded to a lane-dense width (multiple of 128)
        fc_w = (jax.random.normal(k3, (feat_dim, num_attrs), jnp.float32)
                * (1.0 / jnp.sqrt(feat_dim)))
        fc_b = jax.random.normal(k4, (num_attrs,), jnp.float32) * 0.01
        self.fc_w_pad = jnp.zeros((feat_dim, self.a_pad), jnp.float32
                                  ).at[:, :num_attrs].set(fc_w)
        self.fc_b_pad = jnp.zeros((self.a_pad,), jnp.float32).at[:num_attrs].set(fc_b)
        # TODO(synk): landmark-driven roi_pool branch not implemented (roi_pool=None).
        self.roi_pool = None

    @property
    def with_roi_pool(self):
        return hasattr(self, 'roi_pool') and self.roi_pool is not None

    def _run(self, img, attr=None):
        return _predict_fused(img, attr, self.conv_w_t, self.conv_b,
                              self.fc_w_pad, self.fc_b_pad, self.num_attrs)

    # --- abstract methods made concrete -----------------------------------
    def simple_test(self, img, landmark=None):
        probs, _ = self._run(img, None)
        return probs

    def aug_test(self, imgs, landmark=None):
        # batch all augmentations into ONE pallas_call, mean in the wrapper
        num_augs = len(imgs)
        n = imgs[0].shape[0]
        big = jnp.concatenate([jnp.asarray(im) for im in imgs], axis=0)
        probs, _ = self._run(big, None)
        return jnp.mean(probs.reshape(num_augs, n, self.num_attrs), axis=0)

    def forward_train(self, img, landmark, attr, cate):
        probs, loss_sum = self._run(img, attr)     # loss fused into the same kernel
        loss_attr = loss_sum / (img.shape[0] * self.num_attrs)
        return {'loss_attr': loss_attr}

    # --- BasePredictor dispatch (reproduced from the PyTorch base class) ---
    def forward_test(self, img, landmark=None):
        num_augs = len(img)
        if landmark is None:
            landmark = [None] * num_augs
        if num_augs == 1:
            return self.simple_test(img[0], landmark[0])
        else:
            return self.aug_test(img, landmark)

    def forward(self, img, attr=None, cate=None, landmark=None, return_loss=True):
        if return_loss:
            return self.forward_train(img, landmark, attr, cate)
        else:
            return self.forward_test(img, landmark)

    def init_weights(self, pretrained=None):
        # TODO(synk): pretrained checkpoint loading not applicable here.
        pass


# ---------------------------------------------------------------------------
if __name__ == "__main__":
    key = jax.random.PRNGKey(0)
    k_img, k_attr, k_lmk, k_params, k_img2 = jax.random.split(key, 5)

    N, C, H, W = 2, 4, 16, 16
    NUM_ATTRS = 16

    img = jax.random.normal(k_img, (N, C, H, W), jnp.float32)          # NCHW
    attr = (jax.random.uniform(k_attr, (N, NUM_ATTRS)) < 0.5).astype(jnp.float32)
    landmark = jax.random.normal(k_lmk, (N, 8, 2), jnp.float32)        # unused (roi_pool=None)

    model = PallasPredictor(k_params, in_channels=C, feat_dim=32, num_attrs=NUM_ATTRS)

    # train path: forward(..., return_loss=True) -> forward_train (fused loss)
    losses = model.forward(img, attr=attr, landmark=landmark, return_loss=True)
    jax.block_until_ready(losses['loss_attr'])

    # test path: forward(..., return_loss=False) -> forward_test -> simple_test
    probs = model.forward([img], landmark=[landmark], return_loss=False)
    jax.block_until_ready(probs)
    assert probs.shape == (N, NUM_ATTRS)

    # aug-test path: 2 augmentations batched into a single kernel launch
    img_aug = img[:, :, :, ::-1]
    probs_aug = model.forward([img, img_aug], landmark=None, return_loss=False)
    jax.block_until_ready(probs_aug)
    assert probs_aug.shape == (N, NUM_ATTRS)

    # numerical check against a pure-JAX reference
    ref_probs, ref_loss = _reference_forward(img, attr, model.conv_w_t, model.conv_b,
                                             model.fc_w_pad, model.fc_b_pad, NUM_ATTRS)
    assert jnp.allclose(probs, ref_probs, atol=3e-3, rtol=3e-3)
    assert jnp.allclose(losses['loss_attr'], ref_loss, atol=3e-3, rtol=3e-3)

    # exercise the multi-tile grid reduction (HW=2304 -> several spatial tiles)
    H2 = W2 = 48
    img_big = jax.random.normal(k_img2, (N, C, H2, W2), jnp.float32)
    probs_big = model.simple_test(img_big)
    jax.block_until_ready(probs_big)
    ref_big, _ = _reference_forward(img_big, None, model.conv_w_t, model.conv_b,
                                    model.fc_w_pad, model.fc_b_pad, NUM_ATTRS)
    assert jnp.allclose(probs_big, ref_big, atol=3e-3, rtol=3e-3)

    assert bool(jnp.all(jnp.isfinite(probs)))
    assert bool(jnp.isfinite(losses['loss_attr']))

    print("KERNEL_OK")
</pallas_src>

<mosaic_0001>
module attributes {stable_mosaic.version = 11 : i64} {
  func.func @_predictor_kernel(%arg0: i32, %arg1: i32, %arg2: memref<1x4x256xbf16, #tpu.memory_space<vmem>>, %arg3: memref<32x4xf32, #tpu.memory_space<vmem>>, %arg4: memref<32x1xf32, #tpu.memory_space<vmem>>, %arg5: memref<32x128xf32, #tpu.memory_space<vmem>>, %arg6: memref<1x128xf32, #tpu.memory_space<vmem>>, %arg7: memref<1x1x128xf32, #tpu.memory_space<vmem>>, %arg8: memref<1x1x128xf32, #tpu.memory_space<vmem>>, %arg9: memref<1x1x1xf32, #tpu.memory_space<vmem>>, %arg10: memref<32x1xf32, #tpu.memory_space<vmem>>) attributes {dimension_semantics = [#tpu.dimension_semantics<parallel>, #tpu.dimension_semantics<arbitrary>], iteration_bounds = array<i64: 2, 1>, scalar_prefetch = 0 : i64, scratch_operands = 1 : i64, tpu.core_type = #tpu.core_type<tc>, window_params = [{transform_indices = @transform_0, window_bounds = array<i64: 1, 4, 256>}, {pipeline_mode = #tpu.pipeline_mode<synchronous>, transform_indices = @transform_1, window_bounds = array<i64: 32, 4>}, {pipeline_mode = #tpu.pipeline_mode<synchronous>, transform_indices = @transform_2, window_bounds = array<i64: 32, 1>}, {pipeline_mode = #tpu.pipeline_mode<synchronous>, transform_indices = @transform_3, window_bounds = array<i64: 32, 128>}, {pipeline_mode = #tpu.pipeline_mode<synchronous>, transform_indices = @transform_4, window_bounds = array<i64: 1, 128>}, {transform_indices = @transform_5, window_bounds = array<i64: 1, 1, 128>}, {transform_indices = @transform_6, window_bounds = array<i64: 1, 1, 128>}, {transform_indices = @transform_7, window_bounds = array<i64: 1, 1, 1>}]} {
    %c0_i32 = arith.constant 0 : i32
    %0 = arith.cmpi eq, %arg1, %c0_i32 : i32
    %1 = arith.extui %0 : i1 to i32
    %c0_i32_0 = arith.constant 0 : i32
    %2 = arith.cmpi ne, %1, %c0_i32_0 : i32
    scf.if %2 {
      %cst_14 = arith.constant 0.000000e+00 : f32
      %43 = vector.broadcast %cst_14 : f32 to vector<32x1xf32>
      %c0_15 = arith.constant 0 : index
      %c0_16 = arith.constant 0 : index
      %44 = vector.load %arg10[%c0_15, %c0_16] : memref<32x1xf32, #tpu.memory_space<vmem>>, vector<32x1xf32>
      tpu.vector_store %arg10[%c0_15, %c0_16], %43 {strides = array<i32>} : memref<32x1xf32, #tpu.memory_space<vmem>>, vector<32x1xf32>,
    } else {
    }
    %c0 = arith.constant 0 : index
    %c0_1 = arith.constant 0 : index
    %c0_2 = arith.constant 0 : index
    %3 = vector.load %arg2[%c0, %c0_1, %c0_2] : memref<1x4x256xbf16, #tpu.memory_space<vmem>>, vector<1x4x256xbf16>
    %4 = vector.shape_cast %3 : vector<1x4x256xbf16> to vector<4x256xbf16>
    %5 = arith.extf %4 : vector<4x256xbf16> to vector<4x256xf32>
    %c0_3 = arith.constant 0 : index
    %c0_4 = arith.constant 0 : index
    %6 = vector.load %arg3[%c0_3, %c0_4] : memref<32x4xf32, #tpu.memory_space<vmem>>, vector<32x4xf32>
    %7 = vector.extract_strided_slice %6 {offsets = [0, 0], sizes = [32, 1], strides = [1, 1]} : vector<32x4xf32> to vector<32x1xf32>
    %8 = vector.extract_strided_slice %5 {offsets = [0, 0], sizes = [1, 256], strides = [1, 1]} : vector<4x256xf32> to vector<1x256xf32>
    %9 = vector.broadcast %7 : vector<32x1xf32> to vector<32x256xf32>
    %10 = vector.broadcast %8 : vector<1x256xf32> to vector<32x256xf32>
    %11 = arith.mulf %9, %10 : vector<32x256xf32>
    %c0_5 = arith.constant 0 : index
    %c0_6 = arith.constant 0 : index
    %12 = vector.load %arg4[%c0_5, %c0_6] : memref<32x1xf32, #tpu.memory_space<vmem>>, vector<32x1xf32>
    %13 = vector.broadcast %12 : vector<32x1xf32> to vector<32x256xf32>
    %14 = arith.addf %11, %13 : vector<32x256xf32>
    %15 = vector.extract_strided_slice %6 {offsets = [0, 1], sizes = [32, 1], strides = [1, 1]} : vector<32x4xf32> to vector<32x1xf32>
    %16 = vector.extract_strided_slice %5 {offsets = [1, 0], sizes = [1, 256], strides = [1, 1]} : vector<4x256xf32> to vector<1x256xf32>
    %17 = vector.broadcast %15 : vector<32x1xf32> to vector<32x256xf32>
    %18 = vector.broadcast %16 : vector<1x256xf32> to vector<32x256xf32>
    %19 = arith.mulf %17, %18 : vector<32x256xf32>
    %20 = arith.addf %14, %19 : vector<32x256xf32>
    %21 = vector.extract_strided_slice %6 {offsets = [0, 2], sizes = [32, 1], strides = [1, 1]} : vector<32x4xf32> to vector<32x1xf32>
    %22 = vector.extract_strided_slice %5 {offsets = [2, 0], sizes = [1, 256], strides = [1, 1]} : vector<4x256xf32> to vector<1x256xf32>
    %23 = vector.broadcast %21 : vector<32x1xf32> to vector<32x256xf32>
    %24 = vector.broadcast %22 : vector<1x256xf32> to vector<32x256xf32>
    %25 = arith.mulf %23, %24 : vector<32x256xf32>
    %26 = arith.addf %20, %25 : vector<32x256xf32>
    %27 = vector.extract_strided_slice %6 {offsets = [0, 3], sizes = [32, 1], strides = [1, 1]} : vector<32x4xf32> to vector<32x1xf32>
    %28 = vector.extract_strided_slice %5 {offsets = [3, 0], sizes = [1, 256], strides = [1, 1]} : vector<4x256xf32> to vector<1x256xf32>
    %29 = vector.broadcast %27 : vector<32x1xf32> to vector<32x256xf32>
    %30 = vector.broadcast %28 : vector<1x256xf32> to vector<32x256xf32>
    %31 = arith.mulf %29, %30 : vector<32x256xf32>
    %32 = arith.addf %26, %31 : vector<32x256xf32>
    %cst = arith.constant 0.000000e+00 : f32
    %33 = vector.broadcast %cst : f32 to vector<32x256xf32>
    %34 = arith.maximumf %32, %33 : vector<32x256xf32>
    %c0_7 = arith.constant 0 : index
    %c0_8 = arith.constant 0 : index
    %35 = vector.load %arg10[%c0_7, %c0_8] : memref<32x1xf32, #tpu.memory_space<vmem>>, vector<32x1xf32>
    %cst_9 = arith.constant dense<0.000000e+00> : vector<32xf32>
    %36 = vector.multi_reduction <add>, %34, %cst_9 [1] : vector<32x256xf32> to vector<32xf32>
    %37 = vector.shape_cast %36 : vector<32xf32> to vector<32x1xf32>
    %38 = arith.addf %35, %37 : vector<32x1xf32>
    %c0_10 = arith.constant 0 : index
    %c0_11 = arith.constant 0 : index
    %39 = vector.load %arg10[%c0_10, %c0_11] : memref<32x1xf32, #tpu.memory_space<vmem>>, vector<32x1xf32>
    tpu.vector_store %arg10[%c0_10, %c0_11], %38 {strides = array<i32>} : memref<32x1xf32, #tpu.memory_space<vmem>>, vector<32x1xf32>,
    %c0_i32_12 = arith.constant 0 : i32
    %40 = arith.cmpi eq, %arg1, %c0_i32_12 : i32
    %41 = arith.extui %40 : i1 to i32
    %c0_i32_13 = arith.constant 0 : i32
    %42 = arith.cmpi ne, %41, %c0_i32_13 : i32
    scf.if %42 {
      %c0_14 = arith.constant 0 : index
      %c0_15 = arith.constant 0 : index
      %43 = vector.load %arg10[%c0_14, %c0_15] : memref<32x1xf32, #tpu.memory_space<vmem>>, vector<32x1xf32>
      %cst_16 = arith.constant 3.906250e-03 : f32
      %44 = vector.broadcast %cst_16 : f32 to vector<32x1xf32>
      %45 = arith.mulf %43, %44 : vector<32x1xf32>
      %c0_17 = arith.constant 0 : index
      %c0_18 = arith.constant 0 : index
      %46 = vector.load %arg5[%c0_17, %c0_18] : memref<32x128xf32, #tpu.memory_space<vmem>>, vector<32x128xf32>
      %47 = vector.broadcast %45 : vector<32x1xf32> to vector<32x128xf32>
      %48 = arith.mulf %47, %46 : vector<32x128xf32>
      %cst_19 = arith.constant dense<0.000000e+00> : vector<128xf32>
      %49 = vector.multi_reduction <add>, %48, %cst_19 [0] : vector<32x128xf32> to vector<128xf32>
      %50 = vector.shape_cast %49 : vector<128xf32> to vector<1x128xf32>
      %c0_20 = arith.constant 0 : index
      %c0_21 = arith.constant 0 : index
      %51 = vector.load %arg6[%c0_20, %c0_21] : memref<1x128xf32, #tpu.memory_space<vmem>>, vector<1x128xf32>
      %52 = arith.addf %50, %51 : vector<1x128xf32>
      %53 = arith.negf %52 : vector<1x128xf32>
      %54 = math.exp %53 : vector<1x128xf32>
      %cst_22 = arith.constant 1.000000e+00 : f32
      %55 = vector.broadcast %cst_22 : f32 to vector<1x128xf32>
      %56 = arith.addf %55, %54 : vector<1x128xf32>
      %57 = arith.divf %55, %56 : vector<1x128xf32>
      %c0_23 = arith.constant 0 : index
      %c0_24 = arith.constant 0 : index
      %c0_25 = arith.constant 0 : index
      %58 = vector.load %arg8[%c0_23, %c0_24, %c0_25] : memref<1x1x128xf32, #tpu.memory_space<vmem>>, vector<1x1x128xf32>
      %59 = vector.shape_cast %58 : vector<1x1x128xf32> to vector<1x128xf32>
      %60 = vector.shape_cast %57 : vector<1x128xf32> to vector<1x1x128xf32>
      tpu.vector_store %arg8[%c0_23, %c0_24, %c0_25], %60 {strides = array<i32>} : memref<1x1x128xf32, #tpu.memory_space<vmem>>, vector<1x1x128xf32>,
      %c0_26 = arith.constant 0 : index
      %c0_27 = arith.constant 0 : index
      %c0_28 = arith.constant 0 : index
      %61 = vector.load %arg7[%c0_26, %c0_27, %c0_28] : memref<1x1x128xf32, #tpu.memory_space<vmem>>, vector<1x1x128xf32>
      %62 = vector.shape_cast %61 : vector<1x1x128xf32> to vector<1x128xf32>
      %cst_29 = arith.constant 0.000000e+00 : f32
      %63 = vector.broadcast %cst_29 : f32 to vector<1x128xf32>
      %64 = arith.maximumf %52, %63 : vector<1x128xf32>
      %65 = arith.mulf %52, %62 : vector<1x128xf32>
      %66 = arith.subf %64, %65 : vector<1x128xf32>
      %67 = math.absf %52 : vector<1x128xf32>
      %cst_30 = arith.constant 0.000000e+00 : f32
      %68 = vector.broadcast %cst_30 : f32 to vector<1x128xf32>
      %69 = arith.subf %68, %67 : vector<1x128xf32>
      %70 = math.exp %69 : vector<1x128xf32>
      %cst_31 = arith.constant 1.000000e+00 : f32
      %71 = vector.broadcast %cst_31 : f32 to vector<1x128xf32>
      %72 = arith.addf %71, %70 : vector<1x128xf32>
      %73 = math.log %72 : vector<1x128xf32>
      %74 = arith.addf %66, %73 : vector<1x128xf32>
      %75 = tpu.iota {dimensions = array<i32: 1>} : vector<1x128xi32>
      %c16_i32 = arith.constant 16 : i32
      %76 = vector.broadcast %c16_i32 : i32 to vector<1x128xi32>
      %77 = arith.cmpi slt, %75, %76 : vector<1x128xi32>
      %cst_32 = arith.constant 0.000000e+00 : f32
      %78 = vector.broadcast %cst_32 : f32 to vector<1x128xf32>
      %79 = arith.select %77, %74, %78 : vector<1x128xi1>, vector<1x128xf32>
      %cst_33 = arith.constant dense<0.000000e+00> : vector<1xf32>
      %80 = vector.multi_reduction <add>, %79, %cst_33 [1] : vector<1x128xf32> to vector<1xf32>
      %81 = vector.shape_cast %80 : vector<1xf32> to vector<1x1xf32>
      %c0_34 = arith.constant 0 : index
      %c0_35 = arith.constant 0 : index
      %c0_36 = arith.constant 0 : index
      %82 = vector.load %arg9[%c0_34, %c0_35, %c0_36] : memref<1x1x1xf32, #tpu.memory_space<vmem>>, vector<1x1x1xf32>
      %83 = vector.shape_cast %82 : vector<1x1x1xf32> to vector<1x1xf32>
      %84 = vector.shape_cast %81 : vector<1x1xf32> to vector<1x1x1xf32>
      tpu.vector_store %arg9[%c0_34, %c0_35, %c0_36], %84 {strides = array<i32>} : memref<1x1x1xf32, #tpu.memory_space<vmem>>, vector<1x1x1xf32>,
    } else {
    }
    return
  }
  func.func @transform_0(%arg0: i32, %arg1: i32) -> (i32, i32, i32) {
    %c0_i32 = arith.constant 0 : i32
    %c0_i32_0 = arith.constant 0 : i32
    return %arg0, %c0_i32, %arg1 : i32, i32, i32
  }
  func.func @transform_1(%arg0: i32, %arg1: i32) -> (i32, i32) {
    %c0_i32 = arith.constant 0 : i32
    %c0_i32_0 = arith.constant 0 : i32
    %c0_i32_1 = arith.constant 0 : i32
    return %c0_i32, %c0_i32_0 : i32, i32
  }
  func.func @transform_2(%arg0: i32, %arg1: i32) -> (i32, i32) {
    %c0_i32 = arith.constant 0 : i32
    %c0_i32_0 = arith.constant 0 : i32
    %c0_i32_1 = arith.constant 0 : i32
    return %c0_i32, %c0_i32_0 : i32, i32
  }
  func.func @transform_3(%arg0: i32, %arg1: i32) -> (i32, i32) {
    %c0_i32 = arith.constant 0 : i32
    %c0_i32_0 = arith.constant 0 : i32
    %c0_i32_1 = arith.constant 0 : i32
    return %c0_i32, %c0_i32_0 : i32, i32
  }
  func.func @transform_4(%arg0: i32, %arg1: i32) -> (i32, i32) {
    %c0_i32 = arith.constant 0 : i32
    %c0_i32_0 = arith.constant 0 : i32
    %c0_i32_1 = arith.constant 0 : i32
    return %c0_i32, %c0_i32_0 : i32, i32
  }
  func.func @transform_5(%arg0: i32, %arg1: i32) -> (i32, i32, i32) {
    %c0_i32 = arith.constant 0 : i32
    %c0_i32_0 = arith.constant 0 : i32
    %c0_i32_1 = arith.constant 0 : i32
    return %arg0, %c0_i32, %c0_i32_0 : i32, i32, i32
  }
  func.func @transform_6(%arg0: i32, %arg1: i32) -> (i32, i32, i32) {
    %c0_i32 = arith.constant 0 : i32
    %c0_i32_0 = arith.constant 0 : i32
    %c0_i32_1 = arith.constant 0 : i32
    return %arg0, %c0_i32, %c0_i32_0 : i32, i32, i32
  }
  func.func @transform_7(%arg0: i32, %arg1: i32) -> (i32, i32, i32) {
    %c0_i32 = arith.constant 0 : i32
    %c0_i32_0 = arith.constant 0 : i32
    %c0_i32_1 = arith.constant 0 : i32
    return %arg0, %c0_i32, %c0_i32_0 : i32, i32, i32
  }
}

</mosaic_0001>

<bundles_post_ra>
// kernel: tpu_custom_call.1
= control target key start
LH: loop header
LB: loop body
LE: loop exit
PB: predicated region body
PF: predicated region fallthrough
CT: control target
= control target key end

     0   :  { %13 = vsyncpa [#allocation4], 0  ;;  %s1222_s0 = inlined_call_operand.vmem [shape: bf16[2,4,256], index: 0, kind: input, shape index: {}]   ;;  %s1223_s1 = inlined_call_operand.vmem [shape: f32[32,4], index: 1, kind: input, shape index: {}]   ;;  %s1224_s2 = inlined_call_operand.vmem [shape: f32[32,1], index: 2, kind: input, shape index: {}]   ;;  %s1225_s3 = inlined_call_operand.vmem [shape: f32[32,128], index: 3, kind: input, shape index: {}]   ;;  %s1226_s4 = inlined_call_operand.vmem [shape: f32[1,128], index: 4, kind: input, shape index: {}]   ;;  %s1227_s5 = inlined_call_operand.vmem [shape: f32[2,1,128], index: 5, kind: input, shape index: {}]   ;;  %s1228_s6 = inlined_call_operand.hbm [shape: f32[2,1,128], index: 6, kind: output, shape index: {0}]   ;;  %s1229_s7 = inlined_call_operand.vmem [shape: f32[2,1,1], index: 7, kind: output, shape index: {1}]  }
   0x1   :  { %15 = vsyncpa [#allocation4 + $0x1], 0  ;;  %s1020_s24 = smov 0   ;;  %s1022_s25 = smov 0  }
   0x2   :  { %s1024_s26 = smov 0   ;;  %s1026_s27 = smov 0  }
   0x3   :  { %s1028_s28 = smov 0   ;;  %s1030_s29 = smov 0  }
   0x4 LB: > { %s799_s30 = sadd.s32 4294967295, %s972_s29   ;;  %s800_s8 = sadd.s32 4294967294, %s972_s29   ;;  %s972_s29 = sphi %s1030_s29, %s21_s29   ;;  %s968_s28 = sphi %s1028_s28, %s1236_s28   ;;  %s964_s27 = sphi %s1026_s27, %s1235_s27   ;;  %s960_s26 = sphi %s1024_s26, %s1234_s26   ;;  %s956_s25 = sphi %s1022_s25, %s1233_s25   ;;  %s952_s24 = sphi %s1020_s24, %s1232_s24  }
   0x5   : > { %s33_s9 = sadd.s32 1, %s968_s28  ;;  %s178_s10 = sadd.s32 1, %s960_s26 }
   0x6   : > { %p35_p0 = scmp.ge.s32.totalorder %s33_s9, 2  ;;  %p188_p1 = scmp.ne.s32.totalorder %s960_s26, %s956_s25 }
   0x7   : > { %p189_p2 = scmp.eq.s32.totalorder %s799_s30, 1  ;;  %p194_p3 = scmp.ne.s32.totalorder %s956_s25, %s952_s24 }
   0x8   : > { %s1238_s9 = smov (%p35_p0, %s33_s9), 0  ;;  %p195_p5 = scmp.eq.s32.totalorder %s800_s8, 1 }
   0x9   : > { %p1060_p4 = por %p189_p2, %p188_p1  ;;  %s175_s12 = ssub.s32 %s968_s28, %s1238_s9 }
   0xa   : > { %p803_p6 = scmp.ge.s32.totalorder %s972_s29, 1  ;;  %p176_p7 = scmp.eq.s32.totalorder %s175_s12, 0 }
   0xb   : > { %p1067_p8 = por %p195_p5, %p194_p3  ;;  %p270_p9 = scmp.lt.s32.totalorder %s972_s29, 3 }
   0xc   : > { %s1073_s14 = scalar_select %p176_p7, %s960_s26, %s178_s10  }
   0xd   : > { %p271_p10 = pnand %p803_p6, %p270_p9 }
   0xe   : > { %v340_v0 = vld [vmem:[%s1223_s1 + $0x10] sm:$0xff] (!%p271_p10)  ;;  %v338_v1 = vld [vmem:[%s1223_s1] sm:$0xff] (!%p271_p10)  ;;  %v974_v2 = vmov (!%p271_p10), 0   ;;  %v339_v4 = vld [vmem:[%s1223_s1 + $0x8] sm:$0xff] (!%p271_p10)  ;;  %v975_v6 = vmov (!%p271_p10), 1   ;;  %v976_v9 = vmov (!%p271_p10), 2   ;;  %v363_v15 = vlaneseq (!%p271_p10) }
   0xf   : > { %274 = sbr.rel (%p271_p10) target bundleno = 683 (0x2ab), region = 44  ;;  %872 = vset.pattern.permute.xlu1 (!%p271_p10), %v974_v2  ;;  %871 = vset.pattern.permute.xlu0 (!%p271_p10), %v974_v2  ;;  %v389_v3 = vld [vmem:[%s1224_s2] sm:$0xff] (!%p271_p10)  ;;  %v390_v5 = vld [vmem:[%s1224_s2 + $0x8] sm:$0xff] (!%p271_p10)  ;;  %v341_v7 = vld [vmem:[%s1223_s1 + $0x18] sm:$0xff] (!%p271_p10)  ;;  %v977_v11 = vmov (!%p271_p10), 3   ;;  %vm331_vm0 = vcmask (!%p271_p10), 7168  }
  0x10   : > { %354 = vperm.xlu1 (!%p271_p10), %872, %v340_v0   ;;  %344 = vperm.xlu0 (!%p271_p10), %871, %v338_v1   ;;  %v391_v8 = vld [vmem:[%s1224_s2 + $0x10] sm:$0xff] (!%p271_p10)  ;;  %v392_v10 = vld [vmem:[%s1224_s2 + $0x18] sm:$0xff] (!%p271_p10)  ;;  %v978_v12 = vmov (!%p271_p10), 0.0   ;;  %p312_p11 = scmp.lt.s32.totalorder (!%p271_p10), %s964_s27, 1  ;;  %v364_v18 = vshrl.u32 (!%p271_p10), %v363_v15, 7  ;;  %s304_s30 = sand.u32 (!%p271_p10), 1, %s956_s25  }
  0x11   : > { %333 = vst.msk [vmem:[#allocation2 + $0x8] sm:$0xff] (!%p271_p10), %vm331_vm0, %v978_v12  ;;  %332 = vst.msk [vmem:[#allocation2] sm:$0xff] (!%p271_p10), %vm331_vm0, %v978_v12  ;;  %s305_s8 = scalar_lea.vmem (!%p271_p10), [#allocation3], %s304_s30  ;;  %vm677_vm2 = vcmask (!%p271_p10), 1040384   ;;  %s807_s10 = sshll.u32 (!%p271_p10), %s964_s27, 4 }
  0x12   : > { %334 = vst.msk [vmem:[#allocation2 + $0x10] sm:$0xff] (!%p271_p10), %vm331_vm0, %v978_v12  ;;  %335 = vst.msk [vmem:[#allocation2 + $0x18] sm:$0xff] (!%p271_p10), %vm331_vm0, %v978_v12  ;;  %v365_v22 = vsub.s32 (!%p271_p10), 0, %v364_v18  ;;  %v369_v23 = vsub.s32 (!%p271_p10), 4, %v364_v18  ;;  %v439_v29 = vsub.s32 (!%p271_p10), 1, %v364_v18  ;;  %v443_v30 = vsub.s32 (!%p271_p10), 5, %v364_v18  ;;  %s1177_s17 = scalar_lea.hbm (!%p271_p10), %s1228_s6, %s807_s10 }
  0x13   : > { %v489_v31 = vsub.s32 (!%p271_p10), 2, %v364_v18  ;;  %v493_v32 = vsub.s32 (!%p271_p10), 6, %v364_v18  ;;  %v539_v41 = vsub.s32 (!%p271_p10), 3, %v364_v18  ;;  %v543_v42 = vsub.s32 (!%p271_p10), 7, %v364_v18  ;;  %s699_s12 = sshll.u32 (!%p271_p10), %s305_s8, 4  ;;  %s979_s21 = smov (!%p271_p10), [#allocation3]   ;;  %s700_s12 = int_to_ptr.vmem [resolvable:$true] %s699_s12 }
  0x14   : > { %395 = vperm.xlu1 (!%p271_p10), %872, %v389_v3   ;;  %349 = vperm.xlu0 (!%p271_p10), %871, %v339_v4   ;;  %s894_s20 = scalar_lea.vmem (!%p271_p10), %s700_s12, 16 }
  0x15   : > { %p895_p12 = scmp.ne.s32.totalorder (!%p271_p10), %s700_s12, %s894_s20 }
  0x16   : > { %s1105_s18 = scalar_select %p312_p11, %s964_s27, 1 }
  0x17   : > { %p896_p13 = pnand %p895_p12, %p1060_p4 }
  0x18   : > { %873 = vset.pattern.permute.xlu1 %v975_v6  ;;  %400 = vperm.xlu0 %871, %v390_v5   ;;  %s810_s19 = sshll.u32 %s1105_s18, 2  ;;  %s323_s23 = scalar_lea.vmem %s1227_s5, %s1105_s18 }
  0x19   : > { %422 = vperm.xlu1 %873, %v338_v1   ;;  %s319_s22 = scalar_lea.vmem %s1222_s0, %s810_s19  ;;  %s684_s19 = scalar_lea.sflag [#allocation4], %s304_s30 }
  0x1a   : > { %v336_v19 = vld [vmem:[%s319_s22] sm:$0xf]  ;;  %p897_p0 = pneg %p896_p13  ;;  %s898_s22 = sshll.u32 %s979_s21, 4  ;;  %s899_s22 = int_to_ptr.vmem [resolvable:$false] %s898_s22 }
  0x1b   : > { %v337_v24 = vunpack.c.l.bf16 %v336_v19  ;;  %p901_p1 = scmp.lt.s32.totalorder %s700_s12, %s899_s22 }
  0x1c   : > { %874 = vset.pattern.permute.xlu0 %v975_v6 }
  0x1d   : > { %875 = vset.pattern.permute.xlu1 %v974_v2  ;;  %426 = vperm.xlu0 %874, %v339_v4   ;;  %v366_v27 = vrot.slane %v337_v24, %v365_v22  ;;  %v370_v28 = vrot.slane %v337_v24, %v369_v23  ;;  %v440_v37 = vrot.slane %v337_v24, %v439_v29 }
  0x1e   : > { %359 = vperm.xlu1 %875, %v341_v7   ;;  %v444_v38 = vrot.slane %v337_v24, %v443_v30  ;;  %v490_v39 = vrot.slane %v337_v24, %v489_v31  ;;  %v494_v40 = vrot.slane %v337_v24, %v493_v32  ;;  %v540_v51 = vrot.slane %v337_v24, %v539_v41 }
  0x1f   : > { %v376_v35 = vrot.slane %v366_v27, %v365_v22  ;;  %v380_v36 = vrot.slane %v370_v28, %v365_v22  ;;  %v450_v46 = vrot.slane %v440_v37, %v439_v29  ;;  %v544_v52 = vrot.slane %v337_v24, %v543_v42 }
  0x20   : > { %v454_v47 = vrot.slane %v444_v38, %v439_v29  ;;  %v1118_v49 = vrot.slane %v490_v39, %v489_v31  ;;  %v1120_v50 = vrot.slane %v494_v40, %v489_v31  ;;  %v1124_v61 = vrot.slane %v540_v51, %v539_v41 }
  0x21   : > { %430 = vperm.xlu0 %874, %v340_v0   ;;  %v1126_v62 = vrot.slane %v544_v52, %v539_v41 }
  0x22   : > { %405 = vperm.xlu1 %875, %v391_v8  }
  0x25   : > { %877 = vset.pattern.permute.xlu0 %v976_v9 }
  0x26   : > { %876 = vset.pattern.permute.xlu1 %v976_v9  ;;  %476 = vperm.xlu0 %877, %v339_v4  }
  0x27   : > { %472 = vperm.xlu1 %876, %v338_v1  }
  0x2a   : > { %480 = vperm.xlu0 %877, %v340_v0  }
  0x2b   : > { %878 = vset.pattern.permute.xlu1 %v974_v2 }
  0x2c   : > { %410 = vperm.xlu1 %878, %v392_v10  }
  0x2e   : > { %881 = vset.pattern.permute.xlu0 %v977_v11 }
  0x2f   : > { %526 = vperm.xlu0 %881, %v339_v4  }
  0x30   : > { %879 = vset.pattern.permute.xlu1 %v975_v6 }
  0x31   : > { %434 = vperm.xlu1 %879, %v341_v7  }
  0x33   : > { %534 = vperm.xlu0 %881, %v341_v7  }
  0x35   : > { %880 = vset.pattern.permute.xlu1 %v977_v11 }
  0x36   : > { %522 = vperm.xlu1 %880, %v338_v1  }
  0x37   : > { %884 = vset.pattern.permute.xlu0 %v974_v2 }
  0x3a   : > { %882 = vset.pattern.permute.xlu1 %v976_v9 }
  0x3b   : > { %484 = vperm.xlu1 %882, %v341_v7  }
  0x3f   : > { %883 = vset.pattern.permute.xlu1 %v977_v11 }
  0x40   : > { %530 = vperm.xlu1 %883, %v340_v0  }
  0x44   : > { %885 = vset.pattern.permute.xlu1 %v974_v2 }
  0x8f   : > { %v1107_v13 = vpop.permute.xlu1 %354  ;;  %v345_v14 = vpop.permute.xlu0 %344 }
  0x90   : > { %v381_v63 = vmul.f32 %v376_v35, %v345_v14  ;;  %v382_v0 = vmul.f32 %v380_v36, %v345_v14  ;;  %v385_v38 = vmul.f32 %v376_v35, %v1107_v13  ;;  %v386_v39 = vmul.f32 %v380_v36, %v1107_v13 }
  0x93   : > { %v396_v16 = vpop.permute.xlu1 %395  ;;  %v350_v17 = vpop.permute.xlu0 %349 }
  0x94   : > { %v383_v43 = vmul.f32 %v376_v35, %v350_v17  ;;  %v384_v44 = vmul.f32 %v380_v36, %v350_v17  ;;  %v413_v10 = vadd.f32 %v396_v16, %v381_v63  ;;  %v414_v11 = vadd.f32 %v396_v16, %v382_v0 }
  0x97   : > { %v401_v20 = vpop.permute.xlu0 %400 }
  0x98   : > { %v423_v21 = vpop.permute.xlu1 %422  ;;  %v415_v53 = vadd.f32 %v401_v20, %v383_v43  ;;  %v416_v54 = vadd.f32 %v401_v20, %v384_v44 }
  0x99   : > { %v455_v3 = vmul.f32 %v450_v46, %v423_v21  ;;  %v456_v4 = vmul.f32 %v454_v47, %v423_v21 }
  0x9b   : > { %v463_v20 = vadd.f32 %v455_v3, %v413_v10  ;;  %v464_v22 = vadd.f32 %v456_v4, %v414_v11 }
  0x9c   : > { %v427_v25 = vpop.permute.xlu0 %426 }
  0x9d   : > { %v360_v26 = vpop.permute.xlu1 %359  ;;  %v457_v55 = vmul.f32 %v450_v46, %v427_v25  ;;  %v458_v56 = vmul.f32 %v454_v47, %v427_v25 }
  0x9e   : > { %v387_v24 = vmul.f32 %v376_v35, %v360_v26  ;;  %v388_v25 = vmul.f32 %v380_v36, %v360_v26 }
  0x9f   : > { %v465_v1 = vadd.f32 %v457_v55, %v415_v53  ;;  %v466_v2 = vadd.f32 %v458_v56, %v416_v54 }
  0xa0   : > { %v1114_v33 = vpop.permute.xlu0 %430 }
  0xa1   : > { %v1116_v34 = vpop.permute.xlu1 %405  ;;  %v460_v51 = vmul.f32 %v454_v47, %v1114_v33 }
  0xa2   : > { %v417_v44 = vadd.f32 %v1116_v34, %v385_v38  ;;  %v615_v38 = vld [vmem:[%s1225_s3] sm:$0xff] }
  0xa5   : > { %v477_v45 = vpop.permute.xlu0 %476 }
  0xa6   : > { %v473_v48 = vpop.permute.xlu1 %472  ;;  %v507_v58 = vmul.f32 %v1118_v49, %v477_v45  ;;  %v508_v59 = vmul.f32 %v1120_v50, %v477_v45  ;;  %v418_v45 = vadd.f32 %v1116_v34, %v386_v39 }
  0xa7   : > { %v505_v17 = vmul.f32 %v1118_v49, %v473_v48  ;;  %v506_v18 = vmul.f32 %v1120_v50, %v473_v48  ;;  %v459_v48 = vmul.f32 %v450_v46, %v1114_v33 }
  0xa8   : > { %v515_v6 = vadd.f32 %v507_v58, %v465_v1  ;;  %v516_v7 = vadd.f32 %v508_v59, %v466_v2  ;;  %v468_v63 = vadd.f32 %v460_v51, %v418_v45  ;;  %v618_v45 = vld [vmem:[%s1225_s3 + $0x18] sm:$0xff] }
  0xa9   : > { %v481_v57 = vpop.permute.xlu0 %480  ;;  %v513_v27 = vadd.f32 %v505_v17, %v463_v20  ;;  %v514_v28 = vadd.f32 %v506_v18, %v464_v22  ;;  %v582_v22 = vld [vmem:[#allocation2 + $0x18] sm:$0xff] }
  0xaa   : > { %v509_v59 = vmul.f32 %v1118_v49, %v481_v57  ;;  %v510_v34 = vmul.f32 %v1120_v50, %v481_v57 }
  0xab   : > { %v411_v60 = vpop.permute.xlu1 %410 }
  0xac   : > { %v419_v40 = vadd.f32 %v411_v60, %v387_v24  ;;  %v420_v41 = vadd.f32 %v411_v60, %v388_v25  ;;  %v518_v4 = vadd.f32 %v510_v34, %v468_v63  ;;  %v581_v24 = vld [vmem:[#allocation2 + $0x10] sm:$0xff] }
  0xae   : > { %v527_v5 = vpop.permute.xlu0 %526 }
  0xaf   : > { %v557_v8 = vmul.f32 %v1124_v61, %v527_v5  ;;  %v558_v9 = vmul.f32 %v1126_v62, %v527_v5 }
  0xb0   : > { %v435_v12 = vpop.permute.xlu1 %434 }
  0xb1   : > { %v565_v19 = vadd.f32 %v557_v8, %v515_v6  ;;  %v566_v14 = vadd.f32 %v558_v9, %v516_v7  ;;  %v461_v31 = vmul.f32 %v450_v46, %v435_v12  ;;  %v462_v32 = vmul.f32 %v454_v47, %v435_v12  ;;  %v580_v12 = vld [vmem:[#allocation2 + $0x8] sm:$0xff] }
  0xb2   : > { %v535_v26 = vpop.permute.xlu0 %534  ;;  %v467_v47 = vadd.f32 %v459_v48, %v417_v44 }
  0xb3   : > { %v573_v23 = vmax.f32 %v565_v19, 0.0  ;;  %v574_v21 = vmax.f32 %v566_v14, 0.0  ;;  %v469_v52 = vadd.f32 %v461_v31, %v419_v40  ;;  %v470_v53 = vadd.f32 %v462_v32, %v420_v41  ;;  %v579_v19 = vld [vmem:[#allocation2] sm:$0xff]  ;;  %v616_v40 = vld [vmem:[%s1225_s3 + $0x8] sm:$0xff]  ;;  %v617_v41 = vld [vmem:[%s1225_s3 + $0x10] sm:$0xff] }
  0xb4   : > { %v561_v56 = vmul.f32 %v1124_v61, %v535_v26  ;;  %v562_v58 = vmul.f32 %v1126_v62, %v535_v26  ;;  %v517_v3 = vadd.f32 %v509_v59, %v467_v47 }
  0xb5   : > { %v523_v29 = vpop.permute.xlu1 %522  ;;  %v586_v30 = vadd.f32 %v574_v21, %v573_v23 }
  0xb6   : > { %v555_v16 = vmul.f32 %v1124_v61, %v523_v29  ;;  %v556_v37 = vmul.f32 %v1126_v62, %v523_v29 }
  0xb7   : > { %587 = vadd.xlane.f32.xlu0 %v586_v30 }
  0xb8   : > { %v563_v42 = vadd.f32 %v555_v16, %v513_v27  ;;  %v564_v43 = vadd.f32 %v556_v37, %v514_v28 }
  0xba   : > { %v485_v54 = vpop.permute.xlu1 %484  ;;  %v571_v35 = vmax.f32 %v563_v42, 0.0  ;;  %v572_v55 = vmax.f32 %v564_v43, 0.0 }
  0xbb   : > { %v511_v13 = vmul.f32 %v1118_v49, %v485_v54  ;;  %v512_v36 = vmul.f32 %v1120_v50, %v485_v54 }
  0xbc   : > { %v583_v46 = vadd.f32 %v572_v55, %v571_v35 }
  0xbd   : > { %v519_v60 = vadd.f32 %v511_v13, %v469_v52  ;;  %v520_v33 = vadd.f32 %v512_v36, %v470_v53 }
  0xbe   : > { %584 = vadd.xlane.f32.xlu1 %v583_v46 }
  0xbf   : > { %v569_v0 = vadd.f32 %v561_v56, %v519_v60  ;;  %v570_v1 = vadd.f32 %v562_v58, %v520_v33  ;;  %v531_v2 = vpop.permute.xlu1 %530  ;;  %v652_v58 = vld [vmem:[%s1226_s4] sm:$0x1] }
  0xc0   : > { %v559_v5 = vmul.f32 %v1124_v61, %v531_v2  ;;  %v560_v6 = vmul.f32 %v1126_v62, %v531_v2 }
  0xc1   : > { %v577_v7 = vmax.f32 %v569_v0, 0.0  ;;  %v578_v8 = vmax.f32 %v570_v1, 0.0 }
  0xc2   : > { %v567_v49 = vadd.f32 %v559_v5, %v517_v3  ;;  %v568_v9 = vadd.f32 %v560_v6, %v518_v4  ;;  %v661_v3 = vld [vmem:[%s323_s23] sm:$0x1]  ;;  %s900_s23 = scalar_lea.vmem %s899_s22, 32 }
  0xc3   : > { %v592_v50 = vadd.f32 %v578_v8, %v577_v7  ;;  %v674_v7 = vand.u32 127, %v363_v15  ;;  %p902_p2 = scmp.lt.s32.totalorder %s900_s23, %s894_s20 }
  0xc4   : > { %v575_v57 = vmax.f32 %v567_v49, 0.0  ;;  %v576_v10 = vmax.f32 %v568_v9, 0.0 }
  0xc5   : > { %593 = vadd.xlane.f32.xlu1 %v592_v50  ;;  %vm675_vm1 = vcmp.lt.s32.totalorder %v674_v7, 16  ;;  %p903_p3 = por %p902_p2, %p901_p1 }
  0xc6   : > { %v589_v11 = vadd.f32 %v576_v10, %v575_v57 }
  0xc7   : > { %p904_p5 = pnand %p903_p3, %p897_p0 }
  0xc8   : > { %590 = vadd.xlane.f32.xlu0 %v589_v11 }
 0x144   : > { %v588_v17 = vpop.xlane.xlu0 %587 }
 0x145   : > { %v596_v18 = vadd.f32 %v588_v17, %v580_v12 }
 0x147   : > { %601 = vst.msk [vmem:[#allocation2 + $0x8] sm:$0xff] %vm331_vm0, %v596_v18 }
 0x14b   : > { %v585_v14 = vpop.xlane.xlu1 %584 }
 0x14c   : > { %v595_v61 = vadd.f32 %v585_v14, %v579_v19 }
 0x14e   : > { %600 = vst.msk [vmem:[#allocation2] sm:$0xff] %vm331_vm0, %v595_v61  ;;  %v608_v62 = vld [vmem:[#allocation2 + $0x8] sm:$0xff] }
 0x14f   : > { %v612_v20 = vmul.f32 0.00390625, %v608_v62 }
 0x151   : > { %626 = vperm.xlu1 %885, %v612_v20  }
 0x152   : > { %v594_v23 = vpop.xlane.xlu1 %593 }
 0x153   : > { %v598_v21 = vadd.f32 %v594_v23, %v582_v22 }
 0x155   : > { %603 = vst.msk [vmem:[#allocation2 + $0x18] sm:$0xff] %vm331_vm0, %v598_v21  ;;  %v591_v25 = vpop.xlane.xlu0 %590  ;;  %v607_v27 = vld [vmem:[#allocation2] sm:$0xff] }
 0x156   : > { %v597_v28 = vadd.f32 %v591_v25, %v581_v24  ;;  %v611_v29 = vmul.f32 0.00390625, %v607_v27 }
 0x158   : > { %602 = vst.msk [vmem:[#allocation2 + $0x10] sm:$0xff] %vm331_vm0, %v597_v28  ;;  %621 = vperm.xlu0 %884, %v611_v29  }
 0x15c   : > { %v610_v32 = vld [vmem:[#allocation2 + $0x18] sm:$0xff] }
 0x15d   : > { %v614_v16 = vmul.f32 0.00390625, %v610_v32 }
 0x15f   : > { %v609_v30 = vld [vmem:[#allocation2 + $0x10] sm:$0xff] }
 0x160   : > { %v613_v31 = vmul.f32 0.00390625, %v609_v30 }
 0x162   : > { %631 = vperm.xlu1 %885, %v613_v31  }
 0x166   : > { %636 = vperm.xlu1 %885, %v614_v16  }
 0x1d0   : > { %v627_v37 = vpop.permute.xlu1 %626 }
 0x1d1   : > { %v640_v26 = vmul.f32 %v627_v37, %v616_v40 }
 0x1d7   : > { %v622_v39 = vpop.permute.xlu0 %621 }
 0x1d8   : > { %v639_v42 = vmul.f32 %v622_v39, %v615_v38 }
 0x1da   : > { %v643_v48 = vadd.f32 %v640_v26, %v639_v42 }
 0x1e1   : > { %v632_v43 = vpop.permute.xlu1 %631 }
 0x1e2   : > { %v641_v44 = vmul.f32 %v632_v43, %v617_v41 }
 0x1e4   : > { %v644_v52 = vadd.f32 %v643_v48, %v641_v44 }
 0x1e5   : > { %v637_v51 = vpop.permute.xlu1 %636 }
 0x1e6   : > { %v642_v53 = vmul.f32 %v637_v51, %v618_v45 }
 0x1e8   : > { %v645_v54 = vadd.f32 %v644_v52, %v642_v53 }
 0x1ea   : > { %v646_v35 = vrot.slane %v645_v54, 4 }
 0x1ec   : > { %v647_v55 = vadd.f32 %v646_v35, %v645_v54 }
 0x1ee   : > { %v648_v13 = vrot.slane %v647_v55, 2 }
 0x1f0   : > { %v649_v36 = vadd.f32 %v648_v13, %v647_v55 }
 0x1f2   : > { %v650_v56 = vrot.slane %v649_v36, 1 }
 0x1f4   : > { %v651_v59 = vadd.f32 %v650_v56, %v649_v36 }
 0x1f6   : > { %v653_v34 = vadd.f32 %v652_v58, %v651_v59 }
 0x1f8   : > { %v665_v46 = vand.u32 2147483647, %v653_v34  ;;  %v806_v60 = vmul.f32 -1.442695, %v653_v34  ;;  %v662_v5 = vmax.f32 %v653_v34, 0.0  ;;  %v663_v6 = vmul.f32 %v661_v3, %v653_v34 }
 0x1fa   : > { %v666_v33 = vsub.f32 0.0, %v665_v46  ;;  %886 = vpow2.f32 %v806_v60  ;;  %v664_v49 = vsub.f32 %v662_v5, %v663_v6 }
 0x1fc   : > { %v667_v47 = vmul.f32 1.442695, %v666_v33 }
 0x1fe   : > { %888 = vpow2.f32 %v667_v47 }
 0x204   : > { %v887_v63 = vpop.eup %886 }
 0x205   : > { %v657_v0 = vadd.f32 1.0, %v887_v63 }
 0x207   : > { %890 = vrcp.f32 %v657_v0 }
 0x208   : > { %v889_v1 = vpop.eup %888 }
 0x209   : > { %v669_v2 = vadd.f32 1.0, %v889_v1 }
 0x20b   : > { %892 = vlog2.f32 %v669_v2 }
 0x211   : > { %v891_v4 = vpop.eup %890 }
 0x212   : > { %660 = vst [vmem:[%s305_s8] sm:$0x1] %v891_v4 }
 0x215   : > { %v893_v8 = vpop.eup %892 }
 0x216   : > { %v671_v9 = vmul.f32 0.6931472, %v893_v8 }
 0x218   : > { %v672_v50 = vadd.f32 %v671_v9, %v664_v49 }
 0x21a   : > { %v676_v57 = vsel %vm675_vm1, %v672_v50, 0.0 }
 0x21b   : > { %v678_v10 = vsel %vm677_vm2, %v676_v57, 0.0 }
 0x21c   : > { %679 = vadd.xlane.f32.xlu1 %v678_v10 }
 0x21d   : > { %907 = shalt.err (!%p904_p5)
}
 0x21e   : > { %s908_s27 = scalar_lea.hbm %s1177_s17, 16  ;;  %s912_s10 = scalar_lea.hbm %s1228_s6, 32 }
 0x21f   : > { %p909_p6 = scmp.ne.s32.totalorder %s1177_s17, %s908_s27  ;;  %p913_p10 = scmp.lt.u32.totalorder %s1177_s17, %s1228_s6 }
 0x220   : > { %p914_p11 = scmp.lt.u32.totalorder %s912_s10, %s908_s27  ;;  %p916_p13 = scmp.lt.u32.totalorder %s908_s27, %s1177_s17 }
 0x221   : > { %p910_p7 = pnand %p909_p6, %p1060_p4 }
 0x222   : > { %p915_p12 = por %p914_p11, %p913_p10 }
 0x223   : > { %p911_p9 = pneg %p910_p7 }
 0x224   : > { %p917_p0 = por %p916_p13, %p915_p12 }
 0x226   : > { %p918_p1 = pnand %p917_p0, %p911_p9 }
 0x228   : > { %921 = shalt.err (!%p918_p1)
}
 0x229   : > { %811 = dma.vmem_to_hbm [thread:$0]  (%p1060_p4), %s700_s12, 16, %s1177_s17, %s684_s19   ;;  %vm681_vm3 = vcmask 0  }
 0x22a   : > { %s326_s22 = scalar_lea.vmem %s1229_s7, %s1105_s18 }
 0x2a9   : > { %v680_v15 = vpop.xlane.xlu1 %679 }
 0x2aa   : > { %682 = vst.msk [vmem:[%s326_s22] sm:$0x1] %vm681_vm3, %v680_v15 }
 0x2ab PF: > { %p817_p2 = scmp.ge.s32.totalorder %s972_s29, 2  ;;  %s714_s23 = sand.u32 1, %s952_s24  }
 0x2ac   : > { %s715_s27 = scalar_lea.sflag [#allocation4], %s714_s23 }
 0x2ad   : > { %p814_p3 = pnand %p817_p2, %p1067_p8 }
 0x2af   : > { %947 = dma.done.wait (!%p814_p3), %s715_s27, 16  }
 0x2b0   : > { %949 = vsyncadd (!%p814_p3), %s715_s27, 4294967280  ;;  %s21_s29 = sadd.s32 1, %s972_s29   ;;  %s1232_s24 = smov %s956_s25 }
 0x2b1   : > { %p18_p4 = scmp.ge.s32.totalorder %s21_s29, 4   ;;  %s1233_s25 = smov %s960_s26 }
 0x2b2   : > { %s1234_s26 = smov %s1073_s14  ;;  %s1235_s27 = smov %s968_s28 }
 0x2b3   : > { %s1236_s28 = smov %s1238_s9  ;;  %20 = sbr.rel (!%p18_p4) target bundleno = 4 (0x4), region = 102 }
 0x2ba   :  { %725 = vsyncpa [#allocation4], 1 }
 0x2bb   :  { %727 = vsyncpa [#allocation4 + $0x1], 1 }

</bundles_post_ra>
